<compile_context>
chip_gen: v7x
topology: tpu7x:2x2x1
jax: 0.10.0
libtpu: 0.0.40
codegen_flags: <defaults>
</compile_context>

<pallas_src>
import functools

import jax
import jax.numpy as jnp
import numpy as np
from jax.experimental import pallas as pl
from jax.experimental.pallas import tpu as pltpu

_INV_2_16 = float(2.0 ** -16)  # exact power of two -> x * _INV_2_16 == x / 2**16 exactly
_N_SQUARINGS = 16              # base ** (2**16)  ==  square the base 16 times


def _exp_power_kernel(x_ref, o_ref, *, compute_in_fp32):
    x = x_ref[...]
    if compute_in_fp32:
        x = x.astype(jnp.float32)
    base = 1.0 + x * _INV_2_16
    # base ** 65536 via 16 unrolled squarings (exact square-and-multiply chain).
    y = base
    for _ in range(_N_SQUARINGS):
        y = y * y
    o_ref[...] = y.astype(o_ref.dtype)


def _cdiv(a, b):
    return -(-a // b)


def exp_power_app_pallas(inputs, attention_mask=None, seq_op_in_fp32=False):
    """Forward pass of exp_power_app as a Pallas TPU kernel.

    Returns activ(inputs) = (1 + inputs/2**16)**2**16, computed (and returned) in
    float32 when seq_op_in_fp32, exactly like the PyTorch module (no cast back).
    """
    # TODO(synk): the module's `inputs[attention_mask != 0] = 0` is an in-place side
    # effect on the *input* tensor applied AFTER the output is computed; it does not
    # affect the returned value and has no functional JAX equivalent, so it is skipped.
    del attention_mask

    out_dtype = jnp.float32 if seq_op_in_fp32 else inputs.dtype
    orig_shape = inputs.shape
    n = int(np.prod(orig_shape)) if len(orig_shape) > 0 else 1

    itemsize = jnp.dtype(inputs.dtype).itemsize
    sub = 16 if itemsize < 4 else 8            # sublane packing (bf16 vs f32)

    # Lane width: multiple of 128 (lane-dense, unmasked vst); shrink for tiny inputs.
    C = 512 if n >= 512 * sub else 128
    rows = _cdiv(n, C)

    # Row tile: target ~1 MiB blocks (budgeted as f32), multiple of the sublane count.
    bytes_per_row = C * 4
    tr = max(sub, min(1024, (1 << 20) // bytes_per_row))
    tr = max(sub, (tr // sub) * sub)
    rows_ceil = _cdiv(rows, sub) * sub
    tr = min(tr, rows_ceil)
    # Keep >=2 grid steps when possible so v7x's two TensorCores both get work.
    if rows_ceil // tr < 2 and rows_ceil > sub:
        tr = max(sub, (_cdiv(rows_ceil, 2) // sub) * sub)

    rows_padded = _cdiv(rows, tr) * tr
    grid = rows_padded // tr
    padded_n = rows_padded * C

    flat = inputs.reshape(-1)
    if padded_n != n:
        flat = jnp.pad(flat, (0, padded_n - n))   # zeros -> base=1 -> output 1; sliced off
    x2 = flat.reshape(rows_padded, C)

    kernel = functools.partial(_exp_power_kernel,
                               compute_in_fp32=bool(seq_op_in_fp32))

    out = pl.pallas_call(
        kernel,
        out_shape=jax.ShapeDtypeStruct((rows_padded, C), out_dtype),
        grid=(grid,),
        in_specs=[pl.BlockSpec((tr, C), lambda i: (i, 0))],
        out_specs=pl.BlockSpec((tr, C), lambda i: (i, 0)),
        compiler_params=pltpu.CompilerParams(
            dimension_semantics=("parallel",),
            vmem_limit_bytes=32 * 1024 * 1024,
        ),
    )(x2)

    out = out.reshape(-1)
    if padded_n != n:
        out = out[:n]
    return out.reshape(orig_shape)


def exp_power_app_reference(inputs, attention_mask=None, seq_op_in_fp32=False):
    """Pure-JAX reference translation of the PyTorch forward."""
    del attention_mask
    x = inputs.astype(jnp.float32) if seq_op_in_fp32 else inputs
    return (1 + x / 2 ** 16) ** 2 ** 16


if __name__ == "__main__":
    key = jax.random.PRNGKey(0)

    # Attention-score-like shape [B, H, Sq, Sk]
    B, H, S = 2, 4, 16
    x_f32 = jax.random.normal(key, (B, H, S, S), dtype=jnp.float32)
    x_bf16 = x_f32.astype(jnp.bfloat16)

    # Case 1: fp32 input, seq_op_in_fp32=False -> fp32 output
    out1 = jax.block_until_ready(exp_power_app_pallas(x_f32, seq_op_in_fp32=False))
    ref1 = exp_power_app_reference(x_f32, seq_op_in_fp32=False)
    np.testing.assert_allclose(np.asarray(out1), np.asarray(ref1), rtol=1e-2, atol=1e-6)
    assert out1.dtype == x_f32.dtype and out1.shape == x_f32.shape

    # Case 2: bf16 input, seq_op_in_fp32=True -> computed and returned in fp32
    # (the module does NOT cast back to the input dtype).
    out2 = jax.block_until_ready(exp_power_app_pallas(x_bf16, seq_op_in_fp32=True))
    ref2 = exp_power_app_reference(x_bf16, seq_op_in_fp32=True)
    np.testing.assert_allclose(np.asarray(out2), np.asarray(ref2), rtol=1e-2, atol=1e-6)
    assert out2.dtype == jnp.float32 and out2.shape == x_bf16.shape

    print("KERNEL_OK")
</pallas_src>

<mosaic_0001>
module attributes {stable_mosaic.version = 11 : i64} {
  func.func @_exp_power_kernel(%arg0: i32, %arg1: memref<8x128xf32, #tpu.memory_space<vmem>>, %arg2: memref<8x128xf32, #tpu.memory_space<vmem>>) attributes {dimension_semantics = [#tpu.dimension_semantics<parallel>], iteration_bounds = array<i64: 2>, scalar_prefetch = 0 : i64, scratch_operands = 0 : i64, tpu.core_type = #tpu.core_type<tc>, window_params = [{transform_indices = @transform_0, window_bounds = array<i64: 8, 128>}, {transform_indices = @transform_1, window_bounds = array<i64: 8, 128>}]} {
    %c0 = arith.constant 0 : index
    %c0_0 = arith.constant 0 : index
    %0 = vector.load %arg1[%c0, %c0_0] : memref<8x128xf32, #tpu.memory_space<vmem>>, vector<8x128xf32>
    %cst = arith.constant 1.52587891E-5 : f32
    %1 = vector.broadcast %cst : f32 to vector<8x128xf32>
    %2 = arith.mulf %0, %1 : vector<8x128xf32>
    %cst_1 = arith.constant 1.000000e+00 : f32
    %3 = vector.broadcast %cst_1 : f32 to vector<8x128xf32>
    %4 = arith.addf %3, %2 : vector<8x128xf32>
    %5 = arith.mulf %4, %4 : vector<8x128xf32>
    %6 = arith.mulf %5, %5 : vector<8x128xf32>
    %7 = arith.mulf %6, %6 : vector<8x128xf32>
    %8 = arith.mulf %7, %7 : vector<8x128xf32>
    %9 = arith.mulf %8, %8 : vector<8x128xf32>
    %10 = arith.mulf %9, %9 : vector<8x128xf32>
    %11 = arith.mulf %10, %10 : vector<8x128xf32>
    %12 = arith.mulf %11, %11 : vector<8x128xf32>
    %13 = arith.mulf %12, %12 : vector<8x128xf32>
    %14 = arith.mulf %13, %13 : vector<8x128xf32>
    %15 = arith.mulf %14, %14 : vector<8x128xf32>
    %16 = arith.mulf %15, %15 : vector<8x128xf32>
    %17 = arith.mulf %16, %16 : vector<8x128xf32>
    %18 = arith.mulf %17, %17 : vector<8x128xf32>
    %19 = arith.mulf %18, %18 : vector<8x128xf32>
    %20 = arith.mulf %19, %19 : vector<8x128xf32>
    %c0_2 = arith.constant 0 : index
    %c0_3 = arith.constant 0 : index
    %21 = vector.load %arg2[%c0_2, %c0_3] : memref<8x128xf32, #tpu.memory_space<vmem>>, vector<8x128xf32>
    tpu.vector_store %arg2[%c0_2, %c0_3], %20 {strides = array<i32>} : memref<8x128xf32, #tpu.memory_space<vmem>>, vector<8x128xf32>,
    return
  }
  func.func @transform_0(%arg0: i32) -> (i32, i32) {
    %c0_i32 = arith.constant 0 : i32
    %c0_i32_0 = arith.constant 0 : i32
    return %arg0, %c0_i32 : i32, i32
  }
  func.func @transform_1(%arg0: i32) -> (i32, i32) {
    %c0_i32 = arith.constant 0 : i32
    %c0_i32_0 = arith.constant 0 : i32
    return %arg0, %c0_i32 : i32, i32
  }
}

</mosaic_0001>

<bundles_post_ra>
// kernel: tpu_custom_call.1
= control target key start
LH: loop header
LB: loop body
LE: loop exit
PB: predicated region body
PF: predicated region fallthrough
CT: control target
= control target key end

     0   :  { %6 = vsyncpa [#allocation3], 0  ;;  %s565_s0 = inlined_call_operand.hbm [shape: f32[16,128], index: 0, kind: input, shape index: {}]   ;;  %s566_s1 = inlined_call_operand.hbm [shape: f32[16,128], index: 1, kind: output, shape index: {}]  }
   0x1   :  { %8 = vsyncpa [#allocation3 + $0x1], 0 }
   0x2   :  { %9 = vsyncpa [#allocation4], 0 }
   0x3   :  { %11 = vsyncpa [#allocation4 + $0x1], 0  ;;  %s404_s6 = smov 0   ;;  %s406_s7 = smov 0  }
   0x4   :  { %s408_s8 = smov 0   ;;  %s410_s9 = smov 0  }
   0x5 LB: > { %s425_s10 = sadd.s32 4294967295, %s390_s9   ;;  %s236_s11 = sadd.s32 4294967294, %s390_s9   ;;  %s390_s9 = sphi %s410_s9, %s581_s9   ;;  %s386_s8 = sphi %s408_s8, %s580_s8   ;;  %s382_s7 = sphi %s406_s7, %s579_s7   ;;  %s378_s6 = sphi %s404_s6, %s578_s6  }
   0x6   : > { %s429_s12 = sadd.s32 1, %s390_s9   ;;  %s24_s13 = sadd.s32 1, %s386_s8 }
   0x7   : > { %s21_s14 = ssub.s32 %s390_s9, %s429_s12  ;;  %p31_p0 = scmp.ne.s32.totalorder %s386_s8, %s382_s7 }
   0x8   : > { %p22_p1 = scmp.eq.s32.totalorder %s21_s14, 0  ;;  %p32_p2 = scmp.eq.s32.totalorder %s390_s9, 0 }
   0x9   : > { %p37_p3 = scmp.ne.s32.totalorder %s382_s7, %s378_s6  ;;  %p38_p4 = scmp.eq.s32.totalorder %s425_s10, 0 }
   0xa   : > { %s441_s15 = scalar_select %p22_p1, %s386_s8, %s24_s13  }
   0xb   : > { %p443_p5 = por %p32_p2, %p31_p0  ;;  %p447_p6 = por %p38_p4, %p37_p3 }
   0xc   : > { %p61_p7 = scmp.eq.s32.totalorder %s425_s10, 1  ;;  %p67_p8 = scmp.eq.s32.totalorder %s236_s11, 1 }
   0xd   : > { %p260_p10 = scmp.lt.s32.totalorder %s390_s9, 2  ;;  %s87_s20 = sand.u32 1, %s386_s8  }
   0xe   : > { %p454_p11 = por %p61_p7, %p31_p0  ;;  %p458_p12 = por %p67_p8, %p37_p3 }
   0xf   : > { %s240_s21 = sshll.u32 %s390_s9, 7  ;;  %s239_s22 = sshll.u32 %s87_s20, 3 }
  0x10   : > { %s570_s18 = scalar_select %p454_p11, 1, 0 }
  0x11   : > { %s571_s19 = scalar_select %p458_p12, 1, 0 }
  0x12   : > { %s467_s25 = scalar_lea.hbm %s565_s0, %s240_s21  ;;  %s91_s26 = scalar_lea.vmem [#allocation2], %s239_s22 }
  0x13   : > { %s98_s27 = sshll.u32 %s91_s26, 4  ;;  %p471_p13 = pnand %p260_p10, %p443_p5  ;;  %s475_s27 = int_to_ptr.vmem [resolvable:$true] %s98_s27 }
  0x14   : > { %s88_s29 = scalar_lea.sflag [#allocation3], %s87_s20  ;;  %s294_s30 = scalar_lea.hbm %s467_s25, 128 }
  0x15   : > { %p295_p2 = scmp.ne.s32.totalorder %s467_s25, %s294_s30  ;;  %p296_p3 = pneg %p471_p13 }
  0x16   : > { %s299_s4 = scalar_lea.hbm %s565_s0, 256  ;;  %p300_p5 = scmp.lt.u32.totalorder %s467_s25, %s565_s0 }
  0x17   : > { %p297_p4 = pnand %p296_p3, %p295_p2  ;;  %p301_p8 = scmp.lt.u32.totalorder %s299_s4, %s294_s30 }
  0x18   : > { %p303_p9 = scmp.lt.u32.totalorder %s294_s30, %s467_s25 }
  0x19   : > { %p298_p7 = pneg %p297_p4  ;;  %p302_p10 = por %p301_p8, %p300_p5 }
  0x1b   : > { %p304_p0 = por %p303_p9, %p302_p10 }
  0x1d   : > { %p305_p1 = pnand %p304_p0, %p298_p7 }
  0x1f   : > { %308 = shalt.err (!%p305_p1)
}
  0x20   : > { %s309_s13 = scalar_lea.vmem %s475_s27, 128  ;;  %s392_s14 = smov [#allocation2]  }
  0x21   : > { %p310_p2 = scmp.ne.s32.totalorder %s475_s27, %s309_s13  ;;  %s314_s16 = sshll.u32 %s392_s14, 4  ;;  %s315_s16 = int_to_ptr.vmem [resolvable:$false] %s314_s16 }
  0x22   : > { %s316_s20 = scalar_lea.vmem %s315_s16, 256  ;;  %p317_p11 = scmp.lt.s32.totalorder %s475_s27, %s315_s16 }
  0x23   : > { %p312_p4 = pnand %p310_p2, %p296_p3  ;;  %p318_p5 = scmp.lt.s32.totalorder %s316_s20, %s309_s13 }
  0x25   : > { %p313_p12 = pneg %p312_p4  ;;  %p319_p8 = por %p318_p5, %p317_p11 }
  0x27   : > { %p320_p9 = pnand %p319_p8, %p313_p12 }
  0x29   : > { %323 = shalt.err (!%p320_p9)
}
  0x2a   : > { %255 = dma.hbm_to_vmem [thread:$0]  (!%p471_p13), %s467_s25, 128, %s475_s27, %s88_s29  }
  0x2b   : > { %p573_p0 = scmp.lt.s32.totalorder %s390_s9, 3  ;;  %p574_p1 = scmp.ge.s32.totalorder %s390_s9, 1 }
  0x2d   : > { %p104_p3 = pnand %p574_p1, %p573_p0 }
  0x2e   : > { %s509_s21 = sand.u32 (!%p104_p3), 1, %s382_s7  }
  0x2f   : > { %107 = sbr.rel (%p104_p3) target bundleno = 106 (0x6a), region = 24  ;;  %s242_s22 = sshll.u32 (!%p104_p3), %s509_s21, 3 }
  0x30   : > { %s110_s23 = scalar_lea.sflag (!%p104_p3), [#allocation3], %s509_s21  ;;  %s113_s24 = scalar_lea.vmem (!%p104_p3), [#allocation2], %s242_s22 }
  0x36   : > { %369 = dma.done.wait (%p447_p6), %s110_s23, 128  }
  0x37   : > { %371 = vsyncadd (%p447_p6), %s110_s23, 4294967168  ;;  %v132_v0 = vld [vmem:[%s113_s24] sm:$0xff]  ;;  %s131_s17 = scalar_lea.vmem [#allocation5], %s242_s22  ;;  %s245_s26 = sshll.u32 %s425_s10, 7 }
  0x38   : > { %v133_v1 = vmul.f32 1.5258789e-05, %v132_v0  ;;  %s166_s25 = sshll.u32 %s131_s17, 4  ;;  %s523_s29 = scalar_lea.hbm %s566_s1, %s245_s26  ;;  %s518_s25 = int_to_ptr.vmem [resolvable:$true] %s166_s25 }
  0x39   : > { %s153_s30 = scalar_lea.sflag [#allocation4], %s509_s21  ;;  %s324_s2 = scalar_lea.vmem %s518_s25, 128 }
  0x3a   : > { %v134_v2 = vadd.f32 1.0, %v133_v1  ;;  %p325_p6 = scmp.ne.s32.totalorder %s518_s25, %s324_s2  ;;  %p575_p11 = scmp.ne.s32.totalorder %s570_s18, 0 }
  0x3b   : > { %s393_s10 = smov [#allocation5]  }
  0x3c   : > { %v135_v3 = vmul.f32 %v134_v2, %v134_v2  ;;  %p326_p12 = pnand %p325_p6, %p575_p11  ;;  %s328_s3 = sshll.u32 %s393_s10, 4  ;;  %s329_s3 = int_to_ptr.vmem [resolvable:$false] %s328_s3 }
  0x3d   : > { %s330_s4 = scalar_lea.vmem %s329_s3, 256  ;;  %p331_p7 = scmp.lt.s32.totalorder %s518_s25, %s329_s3 }
  0x3e   : > { %v136_v4 = vmul.f32 %v135_v3, %v135_v3  ;;  %p327_p13 = pneg %p326_p12  ;;  %p332_p10 = scmp.lt.s32.totalorder %s330_s4, %s324_s2 }
  0x40   : > { %v137_v5 = vmul.f32 %v136_v4, %v136_v4  ;;  %p333_p2 = por %p332_p10, %p331_p7 }
  0x42   : > { %v138_v6 = vmul.f32 %v137_v5, %v137_v5  ;;  %p334_p4 = pnand %p333_p2, %p327_p13 }
  0x44   : > { %v139_v7 = vmul.f32 %v138_v6, %v138_v6 }
  0x46   : > { %v140_v8 = vmul.f32 %v139_v7, %v139_v7 }
  0x48   : > { %v141_v9 = vmul.f32 %v140_v8, %v140_v8 }
  0x4a   : > { %v142_v10 = vmul.f32 %v141_v9, %v141_v9 }
  0x4c   : > { %v143_v11 = vmul.f32 %v142_v10, %v142_v10 }
  0x4e   : > { %v144_v12 = vmul.f32 %v143_v11, %v143_v11 }
  0x50   : > { %v145_v13 = vmul.f32 %v144_v12, %v144_v12 }
  0x52   : > { %v146_v14 = vmul.f32 %v145_v13, %v145_v13 }
  0x54   : > { %v147_v15 = vmul.f32 %v146_v14, %v146_v14 }
  0x56   : > { %v148_v16 = vmul.f32 %v147_v15, %v147_v15 }
  0x58   : > { %v149_v17 = vmul.f32 %v148_v16, %v148_v16 }
  0x5a   : > { %v150_v18 = vmul.f32 %v149_v17, %v149_v17 }
  0x5c   : > { %151 = vst [vmem:[%s131_s17] sm:$0xff] %v150_v18 }
  0x5d   : > { %337 = shalt.err (!%p334_p4)
}
  0x5e   : > { %s338_s5 = scalar_lea.hbm %s523_s29, 128  ;;  %s342_s14 = scalar_lea.hbm %s566_s1, 256 }
  0x5f   : > { %p339_p5 = scmp.ne.s32.totalorder %s523_s29, %s338_s5  ;;  %p343_p0 = scmp.lt.u32.totalorder %s523_s29, %s566_s1 }
  0x60   : > { %p344_p1 = scmp.lt.u32.totalorder %s342_s14, %s338_s5  ;;  %p346_p6 = scmp.lt.u32.totalorder %s338_s5, %s523_s29 }
  0x61   : > { %p340_p8 = pnand %p339_p5, %p575_p11 }
  0x62   : > { %p345_p3 = por %p344_p1, %p343_p0 }
  0x63   : > { %p341_p9 = pneg %p340_p8 }
  0x64   : > { %p347_p12 = por %p346_p6, %p345_p3 }
  0x66   : > { %p348_p13 = pnand %p347_p12, %p341_p9 }
  0x68   : > { %351 = shalt.err (!%p348_p13)
}
  0x69   : > { %250 = dma.vmem_to_hbm [thread:$0]  (%p575_p11), %s518_s25, 128, %s523_s29, %s153_s30  }
  0x6a PF: > { %s178_s21 = sand.u32 1, %s378_s6   ;;  %p576_p7 = scmp.ne.s32.totalorder %s571_s19, 0 }
  0x6b   : > { %p577_p10 = scmp.ge.s32.totalorder %s390_s9, 2  ;;  %s179_s22 = scalar_lea.sflag [#allocation4], %s178_s21 }
  0x6d   : > { %p257_p2 = pnand %p577_p10, %p576_p7 }
  0x6f   : > { %373 = dma.done.wait (!%p257_p2), %s179_s22, 128  }
  0x70   : > { %375 = vsyncadd (!%p257_p2), %s179_s22, 4294967168  ;;  %p14_p4 = scmp.ge.s32.totalorder %s429_s12, 4   ;;  %s578_s6 = smov %s382_s7 }
  0x71   : > { %s579_s7 = smov %s386_s8  ;;  %s580_s8 = smov %s441_s15 }
  0x72   : > { %s581_s9 = smov %s429_s12  ;;  %16 = sbr.rel (!%p14_p4) target bundleno = 5 (0x5), region = 69 }
  0x79   :  { %184 = vsyncpa [#allocation3], 1 }
  0x7a   :  { %186 = vsyncpa [#allocation3 + $0x1], 1 }
  0x7b   :  { %187 = vsyncpa [#allocation4], 1 }
  0x7c   :  { %189 = vsyncpa [#allocation4 + $0x1], 1 }

</bundles_post_ra>
